<compile_context>
chip_gen: v7x
topology: tpu7x:2x2x1
jax: 0.10.0
libtpu: 0.0.40
codegen_flags: <defaults>
</compile_context>

<pallas_src>
import functools

import jax
import jax.numpy as jnp
from jax.experimental import pallas as pl
from jax.experimental.pallas import tpu as pltpu

NEG_SLOPE = 0.2      # GATConv default negative_slope
_NEG_BIG = -1e30     # mask value for non-edges


def _gat_attn_kernel(heads,
                     asrc_ref, adst_ref, adjt_ref, y_ref, biasw_ref,
                     logp_ref, att_ref):
    """One dst-tile: per-head masked softmax over sources + classifier rows."""
    mask = adjt_ref[...] > 0.0                    # [T, N] edges (incl. self-loops)
    z = biasw_ref[...]                            # [1, C]  bias @ W, broadcasts

    for h in range(heads):                        # heads is tiny -> unrolled
        a_src = asrc_ref[h:h + 1, :]              # [1, N]  source scores
        a_dst = adst_ref[:, h:h + 1]              # [T, 1]  destination scores
        e = a_dst + a_src                         # [T, N]
        e = jnp.where(e > 0, e, NEG_SLOPE * e)    # LeakyReLU(0.2)
        e = jnp.where(mask, e, _NEG_BIG)          # single mask (no extra multiply)
        e = e - jnp.max(e, axis=-1, keepdims=True)
        p = jnp.exp(e)                            # exact 0 off-graph (underflow)
        inv = 1.0 / jnp.sum(p, axis=-1, keepdims=True)   # [T, 1]
        alpha = p * inv                           # softmax over incoming edges

        att_ref[h, :, :] = alpha                  # f32, src on the lane axis

        # Reassociated classifier:  alpha @ (xh_h @ W_h)   (bf16 MXU, f32 acc)
        z = z + jnp.dot(alpha.astype(jnp.bfloat16), y_ref[h],
                        preferred_element_type=jnp.float32)      # [T, C]

    # ELU (alpha=1); clamp so the unselected exp branch stays finite.
    z = jnp.where(z > 0, z, jnp.exp(jnp.minimum(z, 0.0)) - 1.0)
    # log_softmax over classes (dim=1)
    z = z - jnp.max(z, axis=-1, keepdims=True)
    logp_ref[...] = z - jnp.log(jnp.sum(jnp.exp(z), axis=-1, keepdims=True))


def _pick_tile_dst(n, heads, *, vmem_budget_bytes=24 * 1024 * 1024):
    """Size the dst tile against a conservative VMEM budget (v7x has 64 MiB)."""
    # Streamed bytes per dst row, double-buffered: adj_t tile (bf16) + att tile (f32/head).
    per_row = 2 * (n * 2 + heads * n * 4)
    t = vmem_budget_bytes // max(per_row, 1)
    return int(max(8, min(512, t)) // 8 * 8)


def gat_forward(x, edge_index, params, *, heads, hidden, tile_dst=None):
    """Returns (log_probs [N, C], att1 [N, N, heads], None)."""
    N, _ = x.shape
    C = params["W"].shape[1]

    # ---------- small O(N*F) precompute in XLA (glue, not the hot path) ------
    xh = jnp.dot(x, params["lin_w_t"])                            # [N, H*D]
    xh3 = xh.reshape(N, heads, hidden)
    a_src_t = jnp.einsum("nhd,hd->hn", xh3, params["att_src"])    # [H, N]
    a_dst = jnp.einsum("nhd,hd->nh", xh3, params["att_dst"])      # [N, H]
    # Reassociated classifier: y[h] = xh_h @ W_h  ->  z = sum_h alpha_h @ y[h] + b@W
    y = jnp.einsum("nhd,hdc->hnc", xh3,
                   params["W"].reshape(heads, hidden, C)).astype(jnp.bfloat16)
    bias_w = jnp.dot(params["bias"], params["W"])                 # [1, C]

    # Dense adjacency adj_t[dst, src] built directly (no extra .T), self-loops
    # added (GATConv add_self_loops=True default), shipped as bf16.
    adj_t = jnp.zeros((N, N), jnp.float32).at[edge_index[1], edge_index[0]].set(1.0)
    adj_t = jnp.maximum(adj_t, jnp.eye(N, dtype=jnp.float32)).astype(jnp.bfloat16)

    # ---------- tiling over destination nodes --------------------------------
    if tile_dst is None:
        tile_dst = _pick_tile_dst(N, heads)
    tile_dst = int(max(8, (tile_dst // 8) * 8))
    n_tiles = pl.cdiv(N, tile_dst)
    n_pad = n_tiles * tile_dst
    if n_pad != N:
        pad = n_pad - N
        adj_t = jnp.pad(adj_t, ((0, pad), (0, 0)))   # padded rows are fully masked
        a_dst = jnp.pad(a_dst, ((0, pad), (0, 0)))   # and sliced off afterwards

    kern = functools.partial(_gat_attn_kernel, heads)

    logp, att = pl.pallas_call(
        kern,
        out_shape=(jax.ShapeDtypeStruct((n_pad, C), jnp.float32),
                   jax.ShapeDtypeStruct((heads, n_pad, N), jnp.float32)),
        grid_spec=pltpu.PrefetchScalarGridSpec(
            num_scalar_prefetch=0,
            grid=(n_tiles,),
            in_specs=[
                pl.BlockSpec((heads, N), lambda i: (0, 0)),            # a_src (resident)
                pl.BlockSpec((tile_dst, heads), lambda i: (i, 0)),     # a_dst (streamed)
                pl.BlockSpec((tile_dst, N), lambda i: (i, 0)),         # adj_t (streamed)
                pl.BlockSpec((heads, N, C), lambda i: (0, 0, 0)),      # y     (resident)
                pl.BlockSpec((1, C), lambda i: (0, 0)),                # bias @ W
            ],
            out_specs=(
                pl.BlockSpec((tile_dst, C), lambda i: (i, 0)),             # logp
                pl.BlockSpec((heads, tile_dst, N), lambda i: (0, i, 0)),   # att
            ),
        ),
        compiler_params=pltpu.CompilerParams(
            dimension_semantics=("parallel",),          # dst tiles are independent
            vmem_limit_bytes=48 * 1024 * 1024),
    )(a_src_t, a_dst, adj_t, y, bias_w)

    logp = logp[:N]
    # att[h, dst, src] -> att1[src, dst, h]  (matches att1[edge_index] = att_val)
    att1 = jnp.transpose(att[:, :N, :], (2, 1, 0))
    return logp, att1, None


def init_params(key, num_features, hidden, heads, num_classes):
    """Deterministic Glorot-style init (shapes match GATConv + Net.W)."""
    k1, k2, k3, k4 = jax.random.split(key, 4)

    def glorot(k, shape, gain=1.0):
        fan_in, fan_out = shape[-2], shape[-1]
        limit = gain * jnp.sqrt(6.0 / (fan_in + fan_out))
        return jax.random.uniform(k, shape, jnp.float32, -limit, limit)

    return {
        # GATConv.lin weight is [heads*hidden, F]; we pass it pre-transposed.
        "lin_w_t": glorot(k1, (num_features, heads * hidden)),
        "att_src": glorot(k2, (heads, hidden)),
        "att_dst": glorot(k3, (heads, hidden)),
        "bias": jnp.zeros((1, heads * hidden), jnp.float32),   # GATConv bias init
        # Net.W: xavier_uniform_(gain=1.414) as in reset_parameters()
        "W": glorot(k4, (heads * hidden, num_classes), gain=1.414),
    }


if __name__ == "__main__":
    # Small synthetic "citation graph": N nodes, F features, H heads, D hidden, C classes.
    N, F, HEADS, HIDDEN, C, E = 32, 16, 2, 8, 4, 64

    key = jax.random.PRNGKey(0)
    kx, ke, kp = jax.random.split(key, 3)

    x = jax.random.normal(kx, (N, F), jnp.float32)
    edge_index = jax.random.randint(ke, (2, E), 0, N)   # [2, E] (src, dst)
    params = init_params(kp, F, HIDDEN, HEADS, C)

    # TODO(synk): F.dropout (training mode) has no deterministic equivalent;
    # forward is implemented in eval mode (dropout = identity).
    logp, att1, _ = gat_forward(x, edge_index, params, heads=HEADS, hidden=HIDDEN,
                                tile_dst=8)   # grid=(4,) exercises the dst pipeline
    jax.block_until_ready((logp, att1))

    assert logp.shape == (N, C) and att1.shape == (N, N, HEADS)
    assert bool(jnp.all(jnp.isfinite(logp)))
    # attention over incoming edges of each dst node sums to 1 per head
    assert bool(jnp.allclose(att1.sum(axis=0), 1.0, atol=1e-3))
    print("KERNEL_OK")
</pallas_src>

<mosaic_0001>
module attributes {stable_mosaic.version = 11 : i64} {
  func.func @_gat_attn_kernel(%arg0: i32, %arg1: memref<2x32xf32, #tpu.memory_space<vmem>>, %arg2: memref<8x2xf32, #tpu.memory_space<vmem>>, %arg3: memref<8x32xbf16, #tpu.memory_space<vmem>>, %arg4: memref<2x32x4xbf16, #tpu.memory_space<vmem>>, %arg5: memref<1x4xf32, #tpu.memory_space<vmem>>, %arg6: memref<8x4xf32, #tpu.memory_space<vmem>>, %arg7: memref<2x8x32xf32, #tpu.memory_space<vmem>>) attributes {dimension_semantics = [#tpu.dimension_semantics<parallel>], iteration_bounds = array<i64: 4>, scalar_prefetch = 0 : i64, scratch_operands = 0 : i64, tpu.core_type = #tpu.core_type<tc>, window_params = [{pipeline_mode = #tpu.pipeline_mode<synchronous>, transform_indices = @transform_0, window_bounds = array<i64: 2, 32>}, {transform_indices = @transform_1, window_bounds = array<i64: 8, 2>}, {transform_indices = @transform_2, window_bounds = array<i64: 8, 32>}, {pipeline_mode = #tpu.pipeline_mode<synchronous>, transform_indices = @transform_3, window_bounds = array<i64: 2, 32, 4>}, {pipeline_mode = #tpu.pipeline_mode<synchronous>, transform_indices = @transform_4, window_bounds = array<i64: 1, 4>}, {transform_indices = @transform_5, window_bounds = array<i64: 8, 4>}, {transform_indices = @transform_6, window_bounds = array<i64: 2, 8, 32>}]} {
    %c0 = arith.constant 0 : index
    %c0_0 = arith.constant 0 : index
    %0 = vector.load %arg3[%c0, %c0_0] : memref<8x32xbf16, #tpu.memory_space<vmem>>, vector<8x32xbf16>
    %cst = arith.constant 0.000000e+00 : bf16
    %1 = vector.broadcast %cst : bf16 to vector<8x32xbf16>
    %2 = arith.cmpf ogt, %0, %1 : vector<8x32xbf16>
    %c0_1 = arith.constant 0 : index
    %c0_2 = arith.constant 0 : index
    %3 = vector.load %arg5[%c0_1, %c0_2] : memref<1x4xf32, #tpu.memory_space<vmem>>, vector<1x4xf32>
    %c0_3 = arith.constant 0 : index
    %c0_4 = arith.constant 0 : index
    %4 = vector.load %arg1[%c0_3, %c0_4] : memref<2x32xf32, #tpu.memory_space<vmem>>, vector<1x32xf32>
    %c0_5 = arith.constant 0 : index
    %c0_6 = arith.constant 0 : index
    %5 = vector.load %arg2[%c0_5, %c0_6] : memref<8x2xf32, #tpu.memory_space<vmem>>, vector<8x1xf32>
    %6 = vector.broadcast %5 : vector<8x1xf32> to vector<8x32xf32>
    %7 = vector.broadcast %4 : vector<1x32xf32> to vector<8x32xf32>
    %8 = arith.addf %6, %7 : vector<8x32xf32>
    %cst_7 = arith.constant 0.000000e+00 : f32
    %9 = vector.broadcast %cst_7 : f32 to vector<8x32xf32>
    %10 = arith.cmpf ogt, %8, %9 : vector<8x32xf32>
    %cst_8 = arith.constant 2.000000e-01 : f32
    %11 = vector.broadcast %cst_8 : f32 to vector<8x32xf32>
    %12 = arith.mulf %11, %8 : vector<8x32xf32>
    %13 = arith.select %10, %8, %12 : vector<8x32xi1>, vector<8x32xf32>
    %cst_9 = arith.constant -1.000000e+30 : f32
    %14 = vector.broadcast %cst_9 : f32 to vector<8x32xf32>
    %15 = arith.select %2, %13, %14 : vector<8x32xi1>, vector<8x32xf32>
    %cst_10 = arith.constant dense<0xFF800000> : vector<8xf32>
    %16 = vector.multi_reduction <maximumf>, %15, %cst_10 [1] : vector<8x32xf32> to vector<8xf32>
    %17 = vector.shape_cast %16 : vector<8xf32> to vector<8x1xf32>
    %18 = vector.broadcast %17 : vector<8x1xf32> to vector<8x32xf32>
    %19 = arith.subf %15, %18 : vector<8x32xf32>
    %20 = math.exp %19 : vector<8x32xf32>
    %cst_11 = arith.constant dense<0.000000e+00> : vector<8xf32>
    %21 = vector.multi_reduction <add>, %20, %cst_11 [1] : vector<8x32xf32> to vector<8xf32>
    %22 = vector.shape_cast %21 : vector<8xf32> to vector<8x1xf32>
    %cst_12 = arith.constant 1.000000e+00 : f32
    %23 = vector.broadcast %cst_12 : f32 to vector<8x1xf32>
    %24 = arith.divf %23, %22 : vector<8x1xf32>
    %25 = vector.broadcast %24 : vector<8x1xf32> to vector<8x32xf32>
    %26 = arith.mulf %20, %25 : vector<8x32xf32>
    %c0_13 = arith.constant 0 : index
    %c0_14 = arith.constant 0 : index
    %c0_15 = arith.constant 0 : index
    %27 = vector.load %arg7[%c0_13, %c0_14, %c0_15] : memref<2x8x32xf32, #tpu.memory_space<vmem>>, vector<1x8x32xf32>
    %28 = vector.shape_cast %27 : vector<1x8x32xf32> to vector<8x32xf32>
    %29 = vector.shape_cast %26 : vector<8x32xf32> to vector<1x8x32xf32>
    tpu.vector_store %arg7[%c0_13, %c0_14, %c0_15], %29 {strides = array<i32>} : memref<2x8x32xf32, #tpu.memory_space<vmem>>, vector<1x8x32xf32>,
    %30 = arith.truncf %26 : vector<8x32xf32> to vector<8x32xbf16>
    %c0_16 = arith.constant 0 : index
    %c0_17 = arith.constant 0 : index
    %c0_18 = arith.constant 0 : index
    %31 = vector.load %arg4[%c0_16, %c0_17, %c0_18] : memref<2x32x4xbf16, #tpu.memory_space<vmem>>, vector<1x32x4xbf16>
    %32 = vector.shape_cast %31 : vector<1x32x4xbf16> to vector<32x4xbf16>
    %cst_19 = arith.constant dense<0.000000e+00> : vector<8x4xf32>
    %33 = tpu.matmul %30, %32, %cst_19 {dimension_numbers = #tpu.dot_dimension_numbers<[1], [0], [0], [1], [0, 0, 1, 1], [], []>} : vector<8x32xbf16>, vector<32x4xbf16>, vector<8x4xf32> -> vector<8x4xf32>
    %34 = vector.broadcast %3 : vector<1x4xf32> to vector<8x4xf32>
    %35 = arith.addf %34, %33 : vector<8x4xf32>
    %c1 = arith.constant 1 : index
    %c0_20 = arith.constant 0 : index
    %36 = vector.load %arg1[%c1, %c0_20] : memref<2x32xf32, #tpu.memory_space<vmem>>, vector<1x32xf32>
    %c0_21 = arith.constant 0 : index
    %c1_22 = arith.constant 1 : index
    %37 = vector.load %arg2[%c0_21, %c1_22] : memref<8x2xf32, #tpu.memory_space<vmem>>, vector<8x1xf32>
    %38 = vector.broadcast %37 : vector<8x1xf32> to vector<8x32xf32>
    %39 = vector.broadcast %36 : vector<1x32xf32> to vector<8x32xf32>
    %40 = arith.addf %38, %39 : vector<8x32xf32>
    %cst_23 = arith.constant 0.000000e+00 : f32
    %41 = vector.broadcast %cst_23 : f32 to vector<8x32xf32>
    %42 = arith.cmpf ogt, %40, %41 : vector<8x32xf32>
    %cst_24 = arith.constant 2.000000e-01 : f32
    %43 = vector.broadcast %cst_24 : f32 to vector<8x32xf32>
    %44 = arith.mulf %43, %40 : vector<8x32xf32>
    %45 = arith.select %42, %40, %44 : vector<8x32xi1>, vector<8x32xf32>
    %cst_25 = arith.constant -1.000000e+30 : f32
    %46 = vector.broadcast %cst_25 : f32 to vector<8x32xf32>
    %47 = arith.select %2, %45, %46 : vector<8x32xi1>, vector<8x32xf32>
    %cst_26 = arith.constant dense<0xFF800000> : vector<8xf32>
    %48 = vector.multi_reduction <maximumf>, %47, %cst_26 [1] : vector<8x32xf32> to vector<8xf32>
    %49 = vector.shape_cast %48 : vector<8xf32> to vector<8x1xf32>
    %50 = vector.broadcast %49 : vector<8x1xf32> to vector<8x32xf32>
    %51 = arith.subf %47, %50 : vector<8x32xf32>
    %52 = math.exp %51 : vector<8x32xf32>
    %cst_27 = arith.constant dense<0.000000e+00> : vector<8xf32>
    %53 = vector.multi_reduction <add>, %52, %cst_27 [1] : vector<8x32xf32> to vector<8xf32>
    %54 = vector.shape_cast %53 : vector<8xf32> to vector<8x1xf32>
    %cst_28 = arith.constant 1.000000e+00 : f32
    %55 = vector.broadcast %cst_28 : f32 to vector<8x1xf32>
    %56 = arith.divf %55, %54 : vector<8x1xf32>
    %57 = vector.broadcast %56 : vector<8x1xf32> to vector<8x32xf32>
    %58 = arith.mulf %52, %57 : vector<8x32xf32>
    %c1_29 = arith.constant 1 : index
    %c0_30 = arith.constant 0 : index
    %c0_31 = arith.constant 0 : index
    %59 = vector.load %arg7[%c1_29, %c0_30, %c0_31] : memref<2x8x32xf32, #tpu.memory_space<vmem>>, vector<1x8x32xf32>
    %60 = vector.shape_cast %59 : vector<1x8x32xf32> to vector<8x32xf32>
    %61 = vector.shape_cast %58 : vector<8x32xf32> to vector<1x8x32xf32>
    tpu.vector_store %arg7[%c1_29, %c0_30, %c0_31], %61 {strides = array<i32>} : memref<2x8x32xf32, #tpu.memory_space<vmem>>, vector<1x8x32xf32>,
    %62 = arith.truncf %58 : vector<8x32xf32> to vector<8x32xbf16>
    %c1_32 = arith.constant 1 : index
    %c0_33 = arith.constant 0 : index
    %c0_34 = arith.constant 0 : index
    %63 = vector.load %arg4[%c1_32, %c0_33, %c0_34] : memref<2x32x4xbf16, #tpu.memory_space<vmem>>, vector<1x32x4xbf16>
    %64 = vector.shape_cast %63 : vector<1x32x4xbf16> to vector<32x4xbf16>
    %cst_35 = arith.constant dense<0.000000e+00> : vector<8x4xf32>
    %65 = tpu.matmul %62, %64, %cst_35 {dimension_numbers = #tpu.dot_dimension_numbers<[1], [0], [0], [1], [0, 0, 1, 1], [], []>} : vector<8x32xbf16>, vector<32x4xbf16>, vector<8x4xf32> -> vector<8x4xf32>
    %66 = arith.addf %35, %65 : vector<8x4xf32>
    %cst_36 = arith.constant 0.000000e+00 : f32
    %67 = vector.broadcast %cst_36 : f32 to vector<8x4xf32>
    %68 = arith.cmpf ogt, %66, %67 : vector<8x4xf32>
    %cst_37 = arith.constant 0.000000e+00 : f32
    %69 = vector.broadcast %cst_37 : f32 to vector<8x4xf32>
    %70 = arith.minimumf %66, %69 : vector<8x4xf32>
    %71 = math.exp %70 : vector<8x4xf32>
    %cst_38 = arith.constant 1.000000e+00 : f32
    %72 = vector.broadcast %cst_38 : f32 to vector<8x4xf32>
    %73 = arith.subf %71, %72 : vector<8x4xf32>
    %74 = arith.select %68, %66, %73 : vector<8x4xi1>, vector<8x4xf32>
    %cst_39 = arith.constant dense<0xFF800000> : vector<8xf32>
    %75 = vector.multi_reduction <maximumf>, %74, %cst_39 [1] : vector<8x4xf32> to vector<8xf32>
    %76 = vector.shape_cast %75 : vector<8xf32> to vector<8x1xf32>
    %77 = vector.broadcast %76 : vector<8x1xf32> to vector<8x4xf32>
    %78 = arith.subf %74, %77 : vector<8x4xf32>
    %79 = math.exp %78 : vector<8x4xf32>
    %cst_40 = arith.constant dense<0.000000e+00> : vector<8xf32>
    %80 = vector.multi_reduction <add>, %79, %cst_40 [1] : vector<8x4xf32> to vector<8xf32>
    %81 = vector.shape_cast %80 : vector<8xf32> to vector<8x1xf32>
    %82 = math.log %81 : vector<8x1xf32>
    %83 = vector.broadcast %82 : vector<8x1xf32> to vector<8x4xf32>
    %84 = arith.subf %78, %83 : vector<8x4xf32>
    %c0_41 = arith.constant 0 : index
    %c0_42 = arith.constant 0 : index
    %85 = vector.load %arg6[%c0_41, %c0_42] : memref<8x4xf32, #tpu.memory_space<vmem>>, vector<8x4xf32>
    tpu.vector_store %arg6[%c0_41, %c0_42], %84 {strides = array<i32>} : memref<8x4xf32, #tpu.memory_space<vmem>>, vector<8x4xf32>,
    return
  }
  func.func @transform_0(%arg0: i32) -> (i32, i32) {
    %c0_i32 = arith.constant 0 : i32
    %c0_i32_0 = arith.constant 0 : i32
    %c0_i32_1 = arith.constant 0 : i32
    return %c0_i32, %c0_i32_0 : i32, i32
  }
  func.func @transform_1(%arg0: i32) -> (i32, i32) {
    %c0_i32 = arith.constant 0 : i32
    %c0_i32_0 = arith.constant 0 : i32
    return %arg0, %c0_i32 : i32, i32
  }
  func.func @transform_2(%arg0: i32) -> (i32, i32) {
    %c0_i32 = arith.constant 0 : i32
    %c0_i32_0 = arith.constant 0 : i32
    return %arg0, %c0_i32 : i32, i32
  }
  func.func @transform_3(%arg0: i32) -> (i32, i32, i32) {
    %c0_i32 = arith.constant 0 : i32
    %c0_i32_0 = arith.constant 0 : i32
    %c0_i32_1 = arith.constant 0 : i32
    %c0_i32_2 = arith.constant 0 : i32
    return %c0_i32, %c0_i32_0, %c0_i32_1 : i32, i32, i32
  }
  func.func @transform_4(%arg0: i32) -> (i32, i32) {
    %c0_i32 = arith.constant 0 : i32
    %c0_i32_0 = arith.constant 0 : i32
    %c0_i32_1 = arith.constant 0 : i32
    return %c0_i32, %c0_i32_0 : i32, i32
  }
  func.func @transform_5(%arg0: i32) -> (i32, i32) {
    %c0_i32 = arith.constant 0 : i32
    %c0_i32_0 = arith.constant 0 : i32
    return %arg0, %c0_i32 : i32, i32
  }
  func.func @transform_6(%arg0: i32) -> (i32, i32, i32) {
    %c0_i32 = arith.constant 0 : i32
    %c0_i32_0 = arith.constant 0 : i32
    %c0_i32_1 = arith.constant 0 : i32
    return %c0_i32, %arg0, %c0_i32_0 : i32, i32, i32
  }
}

</mosaic_0001>

<bundles_post_ra>
// kernel: tpu_custom_call.1
= control target key start
LH: loop header
LB: loop body
LE: loop exit
PB: predicated region body
PF: predicated region fallthrough
CT: control target
= control target key end

     0   :  { %12 = vsyncpa [#allocation3], 0  ;;  %s993_s0 = inlined_call_operand.vmem [shape: f32[2,32], index: 0, kind: input, shape index: {}]   ;;  %s994_s1 = inlined_call_operand.vmem [shape: f32[32,2], index: 1, kind: input, shape index: {}]   ;;  %s995_s2 = inlined_call_operand.vmem [shape: bf16[32,32], index: 2, kind: input, shape index: {}]   ;;  %s996_s3 = inlined_call_operand.vmem [shape: bf16[2,32,4], index: 3, kind: input, shape index: {}]   ;;  %s997_s4 = inlined_call_operand.vmem [shape: f32[1,4], index: 4, kind: input, shape index: {}]   ;;  %s998_s5 = inlined_call_operand.vmem [shape: f32[32,4], index: 5, kind: output, shape index: {0}]   ;;  %s999_s6 = inlined_call_operand.hbm [shape: f32[2,32,32], index: 6, kind: output, shape index: {1}]  }
   0x1   :  { %14 = vsyncpa [#allocation3 + $0x1], 0  ;;  %s835_s21 = smov 0   ;;  %s837_s22 = smov 0  }
   0x2   :  { %s839_s23 = smov 0   ;;  %s841_s24 = smov 0  }
   0x3 LB: > { %s856_s25 = sadd.s32 4294967295, %s790_s24   ;;  %s611_s26 = sadd.s32 4294967294, %s790_s24   ;;  %s790_s24 = sphi %s841_s24, %s1005_s24   ;;  %s786_s23 = sphi %s839_s23, %s1004_s23   ;;  %s782_s22 = sphi %s837_s22, %s1003_s22   ;;  %s778_s21 = sphi %s835_s21, %s1002_s21  }
   0x4   : > { %s860_s27 = sadd.s32 1, %s790_s24   ;;  %s168_s28 = sadd.s32 1, %s786_s23 }
   0x5   : > { %s165_s29 = ssub.s32 %s790_s24, %s860_s27  ;;  %p178_p0 = scmp.ne.s32.totalorder %s786_s23, %s782_s22 }
   0x6   : > { %p166_p1 = scmp.eq.s32.totalorder %s165_s29, 0  ;;  %p179_p2 = scmp.eq.s32.totalorder %s856_s25, 3 }
   0x7   : > { %p184_p3 = scmp.ne.s32.totalorder %s782_s22, %s778_s21  ;;  %p185_p4 = scmp.eq.s32.totalorder %s611_s26, 3 }
   0x8   : > { %s871_s30 = scalar_select %p166_p1, %s786_s23, %s168_s28  }
   0x9   : > { %p873_p5 = por %p179_p2, %p178_p0  ;;  %p877_p6 = por %p185_p4, %p184_p3 }
   0xa   : > { %p614_p7 = scmp.ge.s32.totalorder %s790_s24, 1  ;;  %p226_p8 = scmp.lt.s32.totalorder %s790_s24, 5 }
   0xc   : > { %p227_p9 = pnand %p614_p7, %p226_p8 }
   0xd   : > { %p263_p10 = scmp.lt.s32.totalorder (!%p227_p9), %s856_s25, 3  ;;  %v792_v0 = vmov (!%p227_p9), 0   ;;  %v793_v4 = vmov (!%p227_p9), 1   ;;  %v619_v5 = vld [vmem:[%s993_s0] ss:$0 sm:$0xff] (!%p227_p9)  ;;  %vm300_vm3 = vcmask (!%p227_p9), 261120  }
   0xe   : > { %230 = sbr.rel (%p227_p9) target bundleno = 1031 (0x407), region = 40  ;;  %708 = vset.pattern.permute.xlu0 (!%p227_p9), %v792_v0  ;;  %v624_v10 = vld [vmem:[%s993_s0 + $0x1] ss:$0 sm:$0xff] (!%p227_p9)  ;;  %v712_v31 = vld [vmem:[%s996_s3 + $0x10] sm:$0xff] (!%p227_p9)   ;;  %v794_v32 = vmov (!%p227_p9), 0.0   ;;  %v711_v33 = vld [vmem:[%s996_s3 + $0x8] sm:$0xff] (!%p227_p9)  }
   0xf   : > { %v710_v30 = vld [vmem:[%s996_s3] sm:$0xff] (!%p227_p9)   ;;  %644 = vmatprep.subr.bf16.mxu1 (!%p227_p9), %v794_v32  ;;  %652 = vmatprep.subr.bf16.mxu0 (!%p227_p9), %v794_v32  ;;  %vm795_vm5 = vmmov (!%p227_p9), 0   ;;  %v713_v34 = vld [vmem:[%s996_s3 + $0x18] sm:$0xff] (!%p227_p9)   ;;  %vm479_vm6 = vcmask (!%p227_p9), 31744   ;;  %s635_s28 = sshll.u32 (!%p227_p9), %s856_s25, 7 }
  0x10   : > { %645 = vmatpush3.bf16.msra.mxu1 (!%p227_p9), %v710_v30  ;;  %653 = vmatpush3.bf16.msra.mxu0 (!%p227_p9), %v712_v31  ;;  %v623_v44 = vld [vmem:[%s997_s4] ss:$0 sm:$0xff] (!%p227_p9)  ;;  %s940_s13 = scalar_lea.hbm (!%p227_p9), %s999_s6, %s635_s28 }
  0x11   : > { %646 = vmatprep.subr.bf16.mxu1 (!%p227_p9), %v794_v32  ;;  %648 = vmatprep.mubr.msk.bf16.mxu1 (!%p227_p9), %vm795_vm5, %v794_v32 }
  0x12   : > { %654 = vmatprep.subr.bf16.mxu0 (!%p227_p9), %v794_v32  ;;  %656 = vmatprep.mubr.msk.bf16.mxu0 (!%p227_p9), %vm795_vm5, %v794_v32 }
  0x14   : > { %647 = vmatpush3.bf16.msra.mxu1 (!%p227_p9), %v711_v33  ;;  %655 = vmatpush3.bf16.msra.mxu0 (!%p227_p9), %v713_v34 }
  0x15   : > { %s885_s9 = scalar_select %p263_p10, %s856_s25, 3 }
  0x16   : > { %s796_s25 = smov [#allocation2]  }
  0x17   : > { %s617_s10 = sshll.u32 %s885_s9, 2  ;;  %s616_s11 = sshll.u32 %s885_s9, 3 }
  0x18   : > { %s270_s14 = scalar_lea.vmem %s995_s2, %s617_s10  ;;  %s266_s17 = scalar_lea.vmem %s994_s1, %s616_s11 }
  0x19   : > { %v278_v1 = vld [vmem:[%s270_s14] sm:$0xf]  ;;  %s732_s16 = sshll.u32 %s796_s25, 4  ;;  %s733_s16 = int_to_ptr.vmem [resolvable:$false] %s732_s16 }
  0x1a   : > { %v282_v2 = vld [vmem:[%s266_s17] sm:$0xff]  ;;  %vm279_vm0 = vcmp.gt.bf16.partialorder %v278_v1, 0  ;;  %s260_s17 = sand.u32 1, %s782_s22  }
  0x1b   : > { %285 = vperm.xlu0 %708, %v282_v2   ;;  %v296_v3 = vsel %vm279_vm0, 65537, %v792_v0  ;;  %s615_s18 = sshll.u32 %s260_s17, 4  ;;  %s946_s14 = scalar_lea.sflag [#allocation3], %s260_s17 }
  0x1c   : > { %v297_v6 = vunpack.c.l.b16 %v296_v3  ;;  %s922_s19 = scalar_lea.vmem [#allocation2], %s615_s18  ;;  %s734_s18 = scalar_lea.vmem %s733_s16, 512 }
  0x1d   : > { %s513_s29 = sshll.u32 %s922_s19, 4  ;;  %s942_s29 = int_to_ptr.vmem [resolvable:$true] %s513_s29 }
  0x1e   : > { %vm298_vm2 = vcmp.ne.s32.totalorder %v297_v6, 0  ;;  %s728_s15 = scalar_lea.vmem %s942_s29, 256  ;;  %p735_p0 = scmp.lt.s32.totalorder %s942_s29, %s733_s16 }
  0x1f   : > { %709 = vset.pattern.permute.xlu0 %v793_v4  ;;  %p729_p11 = scmp.ne.s32.totalorder %s942_s29, %s728_s15  ;;  %p736_p1 = scmp.lt.s32.totalorder %s734_s18, %s728_s15 }
  0x20   : > { %385 = vperm.xlu0 %709, %v282_v2  }
  0x21   : > { %p730_p12 = pnand %p729_p11, %p873_p5  ;;  %p737_p2 = por %p736_p1, %p735_p0 }
  0x23   : > { %p731_p13 = pneg %p730_p12 }
  0x25   : > { %p738_p3 = pnand %p737_p2, %p731_p13 }
  0x9a   : > { %v286_v7 = vpop.permute.xlu0 %285 }
  0x9b   : > { %v292_v8 = vadd.f32 %v619_v5, %v286_v7 }
  0x9d   : > { %v294_v9 = vmul.f32 0.2, %v292_v8  ;;  %vm293_vm1 = vcmp.gt.f32.partialorder %v292_v8, 0.0 }
  0x9f   : > { %v386_v11 = vpop.permute.xlu0 %385  ;;  %v295_v12 = vsel %vm293_vm1, %v292_v8, %v294_v9 }
  0xa0   : > { %v392_v13 = vadd.f32 %v624_v10, %v386_v11  ;;  %v299_v14 = vsel %vm298_vm2, %v295_v12, -1e+30 }
  0xa1   : > { %v301_v15 = vsel %vm300_vm3, %v299_v14, -inf }
  0xa2   : > { %v394_v16 = vmul.f32 0.2, %v392_v13  ;;  %302 = vmax.xlane.f32.xlu1 %v301_v15  ;;  %vm393_vm4 = vcmp.gt.f32.partialorder %v392_v13, 0.0 }
  0xa4   : > { %v395_v17 = vsel %vm393_vm4, %v392_v13, %v394_v16 }
  0xa5   : > { %v396_v18 = vsel %vm298_vm2, %v395_v17, -1e+30 }
  0xa6   : > { %v397_v19 = vsel %vm300_vm3, %v396_v18, -inf }
  0xa7   : > { %398 = vmax.xlane.f32.xlu1 %v397_v19 }
 0x12f   : > { %v303_v20 = vpop.xlane.xlu1 %302 }
 0x130   : > { %v304_v21 = vsub.f32 %v299_v14, %v303_v20 }
 0x132   : > { %v305_v22 = vmul.f32 1.442695, %v304_v21 }
 0x134   : > { %714 = vpow2.f32 %v305_v22  ;;  %v399_v23 = vpop.xlane.xlu1 %398 }
 0x135   : > { %v400_v24 = vsub.f32 %v396_v18, %v399_v23 }
 0x137   : > { %v401_v25 = vmul.f32 1.442695, %v400_v24 }
 0x139   : > { %716 = vpow2.f32 %v401_v25 }
 0x13e   : > { %v715_v26 = vpop.eup %714 }
 0x13f   : > { %v307_v27 = vsel %vm300_vm3, %v715_v26, 0.0 }
 0x140   : > { %308 = vadd.xlane.f32.xlu1 %v307_v27 }
 0x143   : > { %v717_v28 = vpop.eup %716 }
 0x144   : > { %v403_v29 = vsel %vm300_vm3, %v717_v28, 0.0 }
 0x145   : > { %404 = vadd.xlane.f32.xlu0 %v403_v29 }
 0x1cd   : > { %v309_v35 = vpop.xlane.xlu1 %308 }
 0x1ce   : > { %718 = vrcp.f32 %v309_v35 }
 0x1d2   : > { %v405_v36 = vpop.xlane.xlu0 %404 }
 0x1d3   : > { %720 = vrcp.f32 %v405_v36 }
 0x1d8   : > { %v719_v37 = vpop.eup %718 }
 0x1d9   : > { %v312_v38 = vmul.f32 %v719_v37, %v715_v26 }
 0x1db   : > { %313 = vst.msk [vmem:[%s922_s19] sm:$0xff] %vm300_vm3, %v312_v38  ;;  %v314_v39 = vpack.c.bf16 %v312_v38, %v312_v38 }
 0x1dd   : > { %v721_v40 = vpop.eup %720  ;;  %649 = vmatmul.mubr.msk.bf16.vlgmr.msra.gmra.mrb[0].mxu1 %vm300_vm3, %v314_v39 }
 0x1de   : > { %v408_v41 = vmul.f32 %v721_v40, %v717_v28 }
 0x1e0   : > { %625 = vst.msk [vmem:[%s922_s19 + $0x8] sm:$0xff] %vm300_vm3, %v408_v41  ;;  %v411_v42 = vpack.c.bf16 %v408_v41, %v408_v41 }
 0x1e2   : > { %657 = vmatmul.mubr.msk.bf16.vlgmr.msra.gmra.mrb[0].mxu0 %vm300_vm3, %v411_v42 }
 0x2b0   : > { %v368_v43 = vpop.f32.mrb[0].mxu1 }
 0x2b1   : > { %v650_v45 = vpop.f32.mrb[1].mxu1  ;;  %v380_v48 = vadd.f32 %v623_v44, %v368_v43 }
 0x2b2   : > { %v371_v46 = vpop.f32.mrb[2].mxu1 }
 0x2b3   : > { %v651_v47 = vpop.f32.mrb[3].mxu1 }
 0x2b5   : > { %v466_v49 = vpop.f32.mrb[0].mxu0 }
 0x2b6   : > { %v472_v50 = vadd.f32 %v466_v49, %v380_v48  ;;  %v658_v51 = vpop.f32.mrb[1].mxu0 }
 0x2b7   : > { %v469_v52 = vpop.f32.mrb[2].mxu0 }
 0x2b8   : > { %v474_v53 = vmin.f32 %v472_v50, 0.0  ;;  %v659_v54 = vpop.f32.mrb[3].mxu0  ;;  %vm473_vm7 = vcmp.gt.f32.partialorder %v472_v50, 0.0 }
 0x2ba   : > { %v475_v55 = vmul.f32 1.442695, %v474_v53 }
 0x2bc   : > { %722 = vpow2.f32 %v475_v55 }
 0x2c6   : > { %v723_v56 = vpop.eup %722 }
 0x2c7   : > { %v633_v57 = vadd.f32 -1.0, %v723_v56 }
 0x2c9   : > { %v478_v58 = vsel %vm473_vm7, %v472_v50, %v633_v57 }
 0x2ca   : > { %v480_v59 = vsel %vm479_vm6, %v478_v58, -inf }
 0x2cb   : > { %481 = vmax.xlane.f32.xlu1 %v480_v59 }
 0x358   : > { %v482_v60 = vpop.xlane.xlu1 %481 }
 0x359   : > { %v483_v61 = vsub.f32 %v478_v58, %v482_v60 }
 0x35b   : > { %v484_v62 = vmul.f32 1.442695, %v483_v61 }
 0x35d   : > { %724 = vpow2.f32 %v484_v62 }
 0x367   : > { %v725_v63 = vpop.eup %724 }
 0x368   : > { %v486_v0 = vsel %vm479_vm6, %v725_v63, 0.0 }
 0x369   : > { %487 = vadd.xlane.f32.xlu1 %v486_v0 }
 0x36a   : > { %741 = shalt.err (!%p738_p3)
}
 0x36b   : > { %s742_s17 = scalar_lea.hbm %s940_s13, 256  ;;  %s746_s26 = scalar_lea.hbm %s999_s6, 1024 }
 0x36c   : > { %p743_p4 = scmp.ne.s32.totalorder %s940_s13, %s742_s17  ;;  %p747_p9 = scmp.lt.u32.totalorder %s940_s13, %s999_s6 }
 0x36d   : > { %p748_p10 = scmp.lt.u32.totalorder %s746_s26, %s742_s17  ;;  %p750_p12 = scmp.lt.u32.totalorder %s742_s17, %s940_s13 }
 0x36e   : > { %p744_p7 = pnand %p743_p4, %p873_p5 }
 0x36f   : > { %p749_p11 = por %p748_p10, %p747_p9 }
 0x370   : > { %p745_p8 = pneg %p744_p7 }
 0x371   : > { %p751_p13 = por %p750_p12, %p749_p11 }
 0x373   : > { %p752_p0 = pnand %p751_p13, %p745_p8 }
 0x375   : > { %755 = shalt.err (!%p752_p0)
}
 0x376   : > { %s797_s12 = smov 128   ;;  %s798_s15 = smov 512  }
 0x377   : > { %s799_s25 = smov 8   ;;  %s274_s17 = scalar_lea.vmem %s998_s5, %s616_s11 }
 0x378   : > { %662 = dma.vmem_to_hbm [thread:$0]  (%p873_p5), %s942_s29, 256, %s940_s13, %s946_s14, %s797_s12, %s798_s15, %s799_s25  }
 0x3f6   : > { %v488_v1 = vpop.xlane.xlu1 %487 }
 0x3f7   : > { %726 = vlog2.f32 %v488_v1 }
 0x401   : > { %v727_v2 = vpop.eup %726 }
 0x402   : > { %v490_v3 = vmul.f32 0.6931472, %v727_v2 }
 0x404   : > { %v491_v4 = vsub.f32 %v483_v61, %v490_v3 }
 0x406   : > { %492 = vst.msk [vmem:[%s274_s17] sm:$0xff] %vm479_vm6, %v491_v4 }
 0x407 PF: > { %p668_p1 = scmp.ge.s32.totalorder %s790_s24, 2  ;;  %s535_s19 = sand.u32 1, %s778_s21  }
 0x408   : > { %s536_s7 = scalar_lea.sflag [#allocation3], %s535_s19 }
 0x409   : > { %p665_p5 = pnand %p668_p1, %p877_p6 }
 0x40b   : > { %773 = dma.done.wait (!%p665_p5), %s536_s7, 256  }
 0x40c   : > { %775 = vsyncadd (!%p665_p5), %s536_s7, 4294967040  ;;  %p17_p2 = scmp.ge.s32.totalorder %s860_s27, 6   ;;  %s1002_s21 = smov %s782_s22 }
 0x40d   : > { %s1003_s22 = smov %s786_s23  ;;  %s1004_s23 = smov %s871_s30 }
 0x40e   : > { %s1005_s24 = smov %s860_s27  ;;  %19 = sbr.rel (!%p17_p2) target bundleno = 3 (0x3), region = 92 }
 0x415   :  { %541 = vsyncpa [#allocation3], 1 }
 0x416   :  { %543 = vsyncpa [#allocation3 + $0x1], 1 }

</bundles_post_ra>
